<compile_context>
chip_gen: v6e
topology: v6e:2x2x1
jax: 0.10.0
libtpu: 0.0.40
codegen_flags: <defaults>
</compile_context>

<pallas_src>
import functools

import jax
import jax.numpy as jnp
from jax import lax
from jax.experimental import pallas as pl
from jax.experimental.pallas import tpu as pltpu


# 48 MiB scoped VMEM: leaves headroom on v7x (64 MiB physical) and is comfortable on
# v5e / v6e (128 MiB).
_VMEM_LIMIT_BYTES = 48 * 1024 * 1024


def _pick_tile(dim, candidates):
    """Largest candidate that evenly divides `dim`, else the full dim (toy / ragged shapes)."""
    for c in candidates:
        if dim % c == 0:
            return c
    return dim


# ----------------------- tiled linear:  y = x @ W (+ b) ---------------------- #

def _linear_kernel_k1(x_ref, w_ref, o_ref):
    # Full contraction in one tile: no scratch accumulator, single store.
    o_ref[...] = jnp.dot(x_ref[...], w_ref[...],
                         preferred_element_type=jnp.float32).astype(o_ref.dtype)


def _linear_bias_kernel_k1(x_ref, w_ref, b_ref, o_ref):
    acc = jnp.dot(x_ref[...], w_ref[...], preferred_element_type=jnp.float32)
    o_ref[...] = (acc + b_ref[...].astype(jnp.float32)).astype(o_ref.dtype)


def _linear_kernel(x_ref, w_ref, o_ref, acc_ref):
    @pl.when(pl.program_id(2) == 0)
    def _init():
        acc_ref[...] = jnp.zeros(acc_ref.shape, acc_ref.dtype)

    acc_ref[...] += jnp.dot(x_ref[...], w_ref[...], preferred_element_type=jnp.float32)

    @pl.when(pl.program_id(2) == pl.num_programs(2) - 1)
    def _store():
        o_ref[...] = acc_ref[...].astype(o_ref.dtype)


def _linear_bias_kernel(x_ref, w_ref, b_ref, o_ref, acc_ref):
    @pl.when(pl.program_id(2) == 0)
    def _init():
        acc_ref[...] = jnp.zeros(acc_ref.shape, acc_ref.dtype)

    acc_ref[...] += jnp.dot(x_ref[...], w_ref[...], preferred_element_type=jnp.float32)

    @pl.when(pl.program_id(2) == pl.num_programs(2) - 1)
    def _store():
        o_ref[...] = (acc_ref[...] + b_ref[...].astype(jnp.float32)).astype(o_ref.dtype)


def pallas_linear(x2d, w, b=None):
    """x2d: (M, K), w: (K, N), b: (N,) or None  ->  (M, N)."""
    M, K = x2d.shape
    Kw, N = w.shape
    assert K == Kw
    tm = _pick_tile(M, (512, 256, 128))
    tn = _pick_tile(N, (512, 256, 128))
    # Prefer the full contraction in one tile (fewer grid steps, no accumulator revisits,
    # no output re-writeback); only tile K for very large reductions.
    tk = K if K <= 2048 else _pick_tile(K, (1024, 512, 256, 128))
    b2d = None if b is None else b.reshape(1, N)
    cparams2 = pltpu.CompilerParams(
        dimension_semantics=("parallel", "parallel"),
        vmem_limit_bytes=_VMEM_LIMIT_BYTES)
    cparams3 = pltpu.CompilerParams(
        dimension_semantics=("parallel", "parallel", "arbitrary"),
        vmem_limit_bytes=_VMEM_LIMIT_BYTES)

    if tk == K:
        grid = (M // tm, N // tn)
        in_specs = [pl.BlockSpec((tm, K), lambda i, j: (i, 0)),
                    pl.BlockSpec((K, tn), lambda i, j: (0, j))]
        kern, args = _linear_kernel_k1, (x2d, w)
        if b2d is not None:
            in_specs.append(pl.BlockSpec((1, tn), lambda i, j: (0, j)))
            kern, args = _linear_bias_kernel_k1, (x2d, w, b2d)
        return pl.pallas_call(
            kern,
            grid=grid,
            out_shape=jax.ShapeDtypeStruct((M, N), x2d.dtype),
            in_specs=in_specs,
            out_specs=pl.BlockSpec((tm, tn), lambda i, j: (i, j)),
            compiler_params=cparams2,
        )(*args)

    grid = (M // tm, N // tn, K // tk)
    in_specs = [pl.BlockSpec((tm, tk), lambda i, j, k: (i, k)),
                pl.BlockSpec((tk, tn), lambda i, j, k: (k, j))]
    kern, args = _linear_kernel, (x2d, w)
    if b2d is not None:
        in_specs.append(pl.BlockSpec((1, tn), lambda i, j, k: (0, j)))
        kern, args = _linear_bias_kernel, (x2d, w, b2d)
    return pl.pallas_call(
        kern,
        grid=grid,
        out_shape=jax.ShapeDtypeStruct((M, N), x2d.dtype),
        in_specs=in_specs,
        out_specs=pl.BlockSpec((tm, tn), lambda i, j, k: (i, j)),
        scratch_shapes=[pltpu.VMEM((tm, tn), jnp.float32)],
        compiler_params=cparams3,
    )(*args)


# ------------------ flash-style multi-head attention kernel ------------------ #

def _flash_attn_kernel(q_ref, k_ref, v_ref, o_ref,
                       q_sc, k_sc, v_sc, m_sc, l_sc, acc_sc,
                       *, num_heads, head_dim, scale):
    # q_ref : (1, tq,  C)   channel-split q tile of the fused (B, N, 3C) qkv tensor
    # k_ref : (1, tkv, C)   channel-split k tile
    # v_ref : (1, tkv, C)   channel-split v tile
    # o_ref : (1, tq,  C)   lane-dense output block (all heads of one batch per step)
    # q_sc  : (H, tq,  D)   native dtype, filled once per q tile (scale folded in)
    # k_sc/v_sc: (H, tkv, D) native dtype, head-major repack of the kv tile
    # m_sc/l_sc: (H, tq, 1) f32 running max / sum;  acc_sc: (H, tq, D) f32 accumulator
    H, D = num_heads, head_dim
    ki = pl.program_id(2)

    @pl.when(ki == 0)
    def _init():
        # Unpack q ONCE per (batch, q-tile); it is constant across all kv steps.
        # Softmax scale is folded in here: one multiply per q tile, not per score tile.
        for h in range(H):
            q_sc[h] = q_ref[0, :, h * D:(h + 1) * D] * scale
        m_sc[...] = jnp.full(m_sc.shape, -jnp.inf, dtype=m_sc.dtype)
        l_sc[...] = jnp.zeros(l_sc.shape, l_sc.dtype)
        acc_sc[...] = jnp.zeros(acc_sc.shape, acc_sc.dtype)

    # Repack the kv tile head-major so QK^T and PV become single batched MXU ops over
    # the head dim (lets Mosaic pipeline the head matmuls instead of H tiny dots).
    # TODO(synk): replace the per-head slice-stores with one reshape/einshape relayout
    # once that is verified to lower; kept as slice-stores for lowering safety.
    for h in range(H):
        k_sc[h] = k_ref[0, :, h * D:(h + 1) * D]
        v_sc[h] = v_ref[0, :, h * D:(h + 1) * D]

    qh = q_sc[...]            # (H, tq,  D)  native dtype -> MXU native path
    kh = k_sc[...]            # (H, tkv, D)
    vh = v_sc[...]            # (H, tkv, D)

    # Batched QK^T over heads, contracting D; accumulation in f32.
    s = lax.dot_general(qh, kh, (((2,), (2,)), ((0,), (0,))),
                        preferred_element_type=jnp.float32)           # (H, tq, tkv)

    m_prev = m_sc[...]                                                 # (H, tq, 1)
    m_new = jnp.maximum(m_prev, jnp.max(s, axis=-1, keepdims=True))
    alpha = jnp.exp(m_prev - m_new)
    p = jnp.exp(s - m_new)                                             # (H, tq, tkv) f32
    l_sc[...] = alpha * l_sc[...] + jnp.sum(p, axis=-1, keepdims=True)

    # PV in the value dtype (bf16 models feed the MXU bf16), f32 accumulation.
    pv = lax.dot_general(p.astype(vh.dtype), vh, (((2,), (1,)), ((0,), (0,))),
                         preferred_element_type=jnp.float32)           # (H, tq, D)
    acc_sc[...] = alpha * acc_sc[...] + pv
    m_sc[...] = m_new

    @pl.when(ki == pl.num_programs(2) - 1)
    def _finalize():
        inv = pl.reciprocal(l_sc[...], approx=True)                    # EUP slot
        out = acc_sc[...] * inv                                        # (H, tq, D) f32
        # TODO(synk): fuse into one lane-dense (tq, C) store via an in-VMEM head
        # transpose; per-head stores kept for lowering safety (runs once per q tile).
        for h in range(H):
            o_ref[0, :, h * D:(h + 1) * D] = out[h].astype(o_ref.dtype)


def pallas_attention(qkv, num_heads, out_dtype):
    """qkv: (B, N, 3C) fused projection output -> attention output (B, N, C)."""
    B, N, C3 = qkv.shape
    C = C3 // 3
    assert 3 * C == C3
    D = C // num_heads
    assert D * num_heads == C
    # Channel-split q/k/v blocks need a lane-aligned per-slot width.
    assert C % 128 == 0, "embed dim must be a multiple of 128 for split q/k/v DMA blocks"
    scale = D ** (-0.5)

    # q tile is the big lever on kv re-read traffic (total kv reads ~ B*N*2C*(N/tq));
    # kv tile kept moderate so the f32 (H, tq, tkv) score tile and batched-head
    # temporaries stay inside the 48 MiB scoped VMEM budget (v7x / v5e guidance).
    tq = _pick_tile(N, (512, 256, 128))
    tkv = _pick_tile(N, (256, 128))
    grid = (B, N // tq, N // tkv)

    kern = functools.partial(_flash_attn_kernel, num_heads=num_heads, head_dim=D,
                             scale=scale)

    # Channel-split index maps on the fused (B, N, 3C) tensor: block width C along the
    # channel axis; block index 0/1/2 selects q/k/v. No dead-channel DMA, no HBM transpose.
    q_spec = pl.BlockSpec((1, tq, C), lambda b, qi, ki: (b, qi, 0))
    k_spec = pl.BlockSpec((1, tkv, C), lambda b, qi, ki: (b, ki, 1))
    v_spec = pl.BlockSpec((1, tkv, C), lambda b, qi, ki: (b, ki, 2))
    o_spec = pl.BlockSpec((1, tq, C), lambda b, qi, ki: (b, qi, 0))

    return pl.pallas_call(
        kern,
        grid=grid,
        out_shape=jax.ShapeDtypeStruct((B, N, C), out_dtype),
        in_specs=[q_spec, k_spec, v_spec],
        out_specs=o_spec,
        scratch_shapes=[
            pltpu.VMEM((num_heads, tq, D), qkv.dtype),    # q, head-major, pre-scaled
            pltpu.VMEM((num_heads, tkv, D), qkv.dtype),   # k, head-major
            pltpu.VMEM((num_heads, tkv, D), qkv.dtype),   # v, head-major
            pltpu.VMEM((num_heads, tq, 1), jnp.float32),  # running max (lane-padded to 128)
            pltpu.VMEM((num_heads, tq, 1), jnp.float32),  # running sum (lane-padded to 128)
            pltpu.VMEM((num_heads, tq, D), jnp.float32),  # output accumulator
        ],
        compiler_params=pltpu.CompilerParams(
            dimension_semantics=("parallel", "parallel", "arbitrary"),
            vmem_limit_bytes=_VMEM_LIMIT_BYTES,
        ),
    )(qkv, qkv, qkv)   # same array, three channel-split index maps


# --------------------------------- forward ----------------------------------- #

def attention_forward(x, params, num_heads):
    """Reproduces Attention.forward (qkv_bias=False, qk_norm=False, dropout=0)."""
    B, N, C = x.shape
    D = C // num_heads
    assert D * num_heads == C

    x2d = x.reshape(B * N, C)
    qkv = pallas_linear(x2d, params["w_qkv"], params.get("b_qkv"))  # (B*N, 3C)
    qkv = qkv.reshape(B, N, 3 * C)                                  # free reshape, no transpose

    o = pallas_attention(qkv, num_heads, x.dtype)                   # (B, N, C)

    out = pallas_linear(o.reshape(B * N, C), params["w_proj"], params["b_proj"])
    return out.reshape(B, N, C)

    # TODO(synk): attn_drop / proj_drop (p=0.0) and qk_norm=False are identities at the
    # module defaults and are intentionally not implemented as kernels.


# ---------------------------- reference (pure JAX) ---------------------------- #

def attention_reference(x, params, num_heads):
    B, N, C = x.shape
    H = num_heads
    D = C // H
    scale = D ** (-0.5)
    qkv = x @ params["w_qkv"]                        # qkv_bias=False
    qkv = qkv.reshape(B, N, 3, H, D).transpose(2, 0, 3, 1, 4)
    q, k, v = qkv[0], qkv[1], qkv[2]
    s = jnp.einsum("bhnd,bhmd->bhnm", q * scale, k)
    p = jax.nn.softmax(s, axis=-1)
    o = jnp.einsum("bhnm,bhmd->bhnd", p, v)
    o = o.transpose(0, 2, 1, 3).reshape(B, N, C)
    return o @ params["w_proj"] + params["b_proj"]


# ----------------------------------- main ------------------------------------ #

if __name__ == "__main__":
    # Small shapes; C = 128 keeps the channel-split q/k/v blocks lane-aligned.
    B, N, C = 2, 16, 128
    num_heads = 4  # head_dim = 32

    key = jax.random.PRNGKey(0)
    kx, kqkv, kproj, kpb = jax.random.split(key, 4)

    x = jax.random.normal(kx, (B, N, C), dtype=jnp.float32)

    # shapes mirror nn.Linear(dim, dim*3, bias=False) / nn.Linear(dim, dim)
    params = {
        # stored transposed relative to PyTorch: y = x @ W  (W: (in, out))
        "w_qkv": jax.random.normal(kqkv, (C, 3 * C), dtype=jnp.float32) * 0.02,
        "w_proj": jax.random.normal(kproj, (C, C), dtype=jnp.float32) * 0.02,
        "b_proj": jax.random.normal(kpb, (C,), dtype=jnp.float32) * 0.02,
    }

    out = attention_forward(x, params, num_heads)
    out = jax.block_until_ready(out)

    ref = attention_reference(x, params, num_heads)
    assert out.shape == (B, N, C)
    assert jnp.allclose(out, ref, atol=2e-3, rtol=2e-3), "mismatch vs pure-JAX reference"

    print("KERNEL_OK")
</pallas_src>

<mosaic_0001>
module attributes {stable_mosaic.version = 11 : i64} {
  func.func @_linear_kernel_k1(%arg0: i32, %arg1: i32, %arg2: memref<32x128xf32, #tpu.memory_space<vmem>>, %arg3: memref<128x128xf32, #tpu.memory_space<vmem>>, %arg4: memref<32x128xf32, #tpu.memory_space<vmem>>) attributes {dimension_semantics = [#tpu.dimension_semantics<parallel>, #tpu.dimension_semantics<parallel>], iteration_bounds = array<i64: 1, 3>, scalar_prefetch = 0 : i64, scratch_operands = 0 : i64, tpu.core_type = #tpu.core_type<tc>, window_params = [{transform_indices = @transform_0, window_bounds = array<i64: 32, 128>}, {transform_indices = @transform_1, window_bounds = array<i64: 128, 128>}, {transform_indices = @transform_2, window_bounds = array<i64: 32, 128>}]} {
    %c0 = arith.constant 0 : index
    %c0_0 = arith.constant 0 : index
    %0 = vector.load %arg2[%c0, %c0_0] : memref<32x128xf32, #tpu.memory_space<vmem>>, vector<32x128xf32>
    %c0_1 = arith.constant 0 : index
    %c0_2 = arith.constant 0 : index
    %1 = vector.load %arg3[%c0_1, %c0_2] : memref<128x128xf32, #tpu.memory_space<vmem>>, vector<128x128xf32>
    %cst = arith.constant dense<0.000000e+00> : vector<32x128xf32>
    %2 = tpu.matmul %0, %1, %cst {dimension_numbers = #tpu.dot_dimension_numbers<[1], [0], [0], [1], [0, 0, 1, 1], [], []>} : vector<32x128xf32>, vector<128x128xf32>, vector<32x128xf32> -> vector<32x128xf32>
    %c0_3 = arith.constant 0 : index
    %c0_4 = arith.constant 0 : index
    %3 = vector.load %arg4[%c0_3, %c0_4] : memref<32x128xf32, #tpu.memory_space<vmem>>, vector<32x128xf32>
    tpu.vector_store %arg4[%c0_3, %c0_4], %2 {strides = array<i32>} : memref<32x128xf32, #tpu.memory_space<vmem>>, vector<32x128xf32>,
    return
  }
  func.func @transform_0(%arg0: i32, %arg1: i32) -> (i32, i32) {
    %c0_i32 = arith.constant 0 : i32
    %c0_i32_0 = arith.constant 0 : i32
    return %arg0, %c0_i32 : i32, i32
  }
  func.func @transform_1(%arg0: i32, %arg1: i32) -> (i32, i32) {
    %c0_i32 = arith.constant 0 : i32
    %c0_i32_0 = arith.constant 0 : i32
    return %c0_i32, %arg1 : i32, i32
  }
  func.func @transform_2(%arg0: i32, %arg1: i32) -> (i32, i32) {
    %c0_i32 = arith.constant 0 : i32
    return %arg0, %arg1 : i32, i32
  }
}

</mosaic_0001>

<bundles_post_ra>
// kernel: tpu_custom_call.1
= control target key start
LH: loop header
LB: loop body
LE: loop exit
PB: predicated region body
PF: predicated region fallthrough
CT: control target
= control target key end

     0   :  { %7 = vsyncpa [#allocation3], 0  ;;  %s967_s0 = inlined_call_operand.hbm [shape: f32[32,128], index: 0, kind: input, shape index: {}]   ;;  %s968_s1 = inlined_call_operand.hbm [shape: f32[128,384], index: 1, kind: input, shape index: {}]   ;;  %s969_s2 = inlined_call_operand.hbm [shape: f32[32,384], index: 2, kind: output, shape index: {}]  }
   0x1   :  { %8 = vsyncpa [#allocation6], 0 }
   0x2   :  { %10 = vsyncpa [#allocation6 + $0x1], 0 }
   0x3   :  { %11 = vsyncpa [#allocation4], 0 }
   0x4   :  { %13 = vsyncpa [#allocation4 + $0x1], 0  ;;  %s770_s9 = smov 0   ;;  %s772_s10 = smov 0  }
   0x5   :  { %s774_s11 = smov 0   ;;  %s776_s12 = smov 0  }
   0x6   :  { %s778_s13 = smov 0   ;;  %s780_s14 = smov 0  }
   0x7 LB: > { %s422_s15 = sadd.s32 4294967295, %s744_s14   ;;  %s423_s16 = sadd.s32 4294967294, %s744_s14   ;;  %s744_s14 = sphi %s780_s14, %s19_s14   ;;  %s740_s13 = sphi %s778_s13, %s992_s13   ;;  %s736_s12 = sphi %s776_s12, %s991_s12   ;;  %s732_s11 = sphi %s774_s11, %s990_s11   ;;  %s728_s10 = sphi %s772_s10, %s989_s10   ;;  %s724_s9 = sphi %s770_s9, %s988_s9  }
   0x8   : > { %p71_p0 = scmp.ne.s32.totalorder %s732_s11, %s728_s10  ;;  %p72_p1 = scmp.eq.s32.totalorder %s744_s14, 0 }
   0x9   : > { %p77_p2 = scmp.ne.s32.totalorder %s728_s10, %s724_s9  ;;  %p807_p3 = scmp.eq.s32.totalorder %s422_s15, 0 }
   0xa   : > { %p811_p4 = por %p72_p1, %p71_p0  ;;  %p103_p5 = scmp.eq.s32.totalorder %s422_s15, 2 }
   0xb   : > { %p817_p6 = por %p807_p3, %p77_p2  ;;  %p109_p7 = scmp.eq.s32.totalorder %s423_s16, 2 }
   0xc   : > { %p821_p8 = por %p103_p5, %p71_p0  ;;  %p424_p9 = scmp.ge.s32.totalorder %s744_s14, 1 }
   0xd   : > { %s976_s19 = scalar_select %p817_p6, 1, 0 }
   0xe   : > { %s977_s20 = scalar_select %p821_p8, 1, 0 }
   0xf   : > { %p826_p10 = por %p109_p7, %p77_p2  ;;  %p116_p11 = scmp.lt.s32.totalorder %s744_s14, 4 }
  0x10   : > { %s746_s23 = smov [#allocation2]   ;;  %p548_p0 = scmp.lt.s32.totalorder %s744_s14, 3 }
  0x11   : > { %s978_s21 = scalar_select %p826_p10, 1, 0 }
  0x12   : > { %p831_p12 = pnand %p424_p9, %p116_p11  ;;  %s131_s24 = sshll.u32 %s746_s23, 4  ;;  %s132_s24 = int_to_ptr.vmem [resolvable:$true] %s131_s24 }
  0x13   : > { %979 = sst [smem:[#allocation11_spill]] %s978_s21  ;;  %p846_p2 = pnand %p548_p0, %p811_p4 }
  0x14   : > { %p535_p13 = pneg %p831_p12  ;;  %s28_s27 = sadd.s32 1, %s740_s13 }
  0x15   : > { %s617_s28 = scalar_lea.vmem %s132_s24, 512  ;;  %p625_p10 = scmp.lt.s32.totalorder %s132_s24, %s132_s24 }
  0x16   : > { %p840_p1 = pnand %p535_p13, %p807_p3  ;;  %p618_p7 = scmp.ne.s32.totalorder %s132_s24, %s617_s28 }
  0x17   : > { %p626_p8 = scmp.lt.s32.totalorder %s617_s28, %s617_s28 }
  0x18   : > { %p608_p5 = pneg %p840_p1 }
  0x19   : > { %p627_p6 = por %p626_p8, %p625_p10 }
  0x1a   : > { %p620_p9 = pnand %p618_p7, %p608_p5 }
  0x1c   : > { %p621_p11 = pneg %p620_p9 }
  0x1e   : > { %p628_p13 = pnand %p627_p6, %p621_p11 }
  0x20   : > { %631 = shalt.err (!%p628_p13)
}
  0x21   : > { %s973_s29 = smov 128   ;;  %s748_s30 = smov 8  }
  0x22   : > { %538 = dma.hbm_to_vmem [thread:$0]  (!%p840_p1), %s967_s0, 512, %s132_s24, [#allocation3], %s973_s29, %s973_s29, %s748_s30  }
  0x23   : > { %p29_p4 = scmp.ge.s32.totalorder %s28_s27, 3  ;;  %s64_s5 = sadd.s32 1, %s732_s11 }
  0x24   : > { %s145_s6 = sand.u32 1, %s732_s11   ;;  %s428_s15 = sshll.u32 %s740_s13, 7 }
  0x25   : > { %s994_s27 = smov (%p29_p4, %s28_s27), 0  ;;  %s427_s7 = sshll.u32 %s145_s6, 7 }
  0x26   : > { %s61_s8 = ssub.s32 %s740_s13, %s994_s27  ;;  %s154_s23 = scalar_lea.hbm %s968_s1, %s428_s15 }
  0x27   : > { %p62_p6 = scmp.eq.s32.totalorder %s61_s8, 0  ;;  %s149_s25 = scalar_lea.vmem [#allocation5], %s427_s7 }
  0x28   : > { %s155_s28 = sshll.u32 %s149_s25, 4  ;;  %s146_s24 = scalar_lea.sflag [#allocation6], %s145_s6  ;;  %s156_s28 = int_to_ptr.vmem [resolvable:$true] %s155_s28 }
  0x29   : > { %s872_s21 = scalar_select %p62_p6, %s732_s11, %s64_s5  }
  0x2a   : > { %p634_p8 = pneg %p846_p2  ;;  %s645_s3 = scalar_lea.vmem %s156_s28, 2048 }
  0x2b   : > { %p646_p10 = scmp.ne.s32.totalorder %s156_s28, %s645_s3  ;;  %s749_s4 = smov [#allocation5]  }
  0x2c   : > { %s650_s29 = sshll.u32 %s749_s4, 4  ;;  %s651_s29 = int_to_ptr.vmem [resolvable:$false] %s650_s29 }
  0x2d   : > { %p648_p0 = pnand %p646_p10, %p634_p8  ;;  %s652_s8 = scalar_lea.vmem %s651_s29, 4096 }
  0x2e   : > { %p653_p5 = scmp.lt.s32.totalorder %s156_s28, %s651_s29  ;;  %p654_p7 = scmp.lt.s32.totalorder %s652_s8, %s645_s3 }
  0x2f   : > { %p649_p1 = pneg %p648_p0 }
  0x30   : > { %p655_p9 = por %p654_p7, %p653_p5 }
  0x32   : > { %p656_p11 = pnand %p655_p9, %p649_p1 }
  0x34   : > { %659 = shalt.err (!%p656_p11)
}
  0x35   : > { %s750_s7 = smov 384   ;;  %s983_s5 = smov 128  }
  0x36   : > { %542 = dma.hbm_to_vmem [thread:$0]  (!%p846_p2), %s154_s23, 2048, %s156_s28, %s146_s24, %s750_s7, %s983_s5, %s748_s30  }
  0x37   : > { %167 = sbr.rel (%p831_p12) target bundleno = 309 (0x135), region = 28 }
  0x3c   : > { %711 = dma.done.wait (%p807_p3), [#allocation3], 512  }
  0x3d   : > { %713 = vsyncadd (%p807_p3), [#allocation3], 4294966784  ;;  %s887_s29 = sand.u32 1, %s728_s10   ;;  %p984_p2 = scmp.ne.s32.totalorder %s976_s19, 0 }
  0x3e   : > { %s431_s6 = sshll.u32 %s887_s29, 7  ;;  %s174_s26 = scalar_lea.sflag [#allocation6], %s887_s29 }
  0x3f   : > { %s891_s15 = scalar_lea.vmem [#allocation5], %s431_s6 }
  0x40   : > { %715 = dma.done.wait (%p984_p2), %s174_s26, 2048  }
  0x41   : > { %717 = vsyncadd (%p984_p2), %s174_s26, 4294965248  ;;  %v219_v0 = vld [vmem:[%s891_s15 + $0x78] sm:$0xff]  ;;  %v218_v1 = vld [vmem:[%s891_s15 + $0x70] sm:$0xff]  ;;  %s432_s17 = sshll.u32 %s887_s29, 5  ;;  %s434_s30 = sshll.u32 %s736_s12, 7 }
  0x42   : > { %457 = vmatprep.subr.mxu0 %v219_v0  ;;  %495 = vmatprep.subr.mxu1 %v219_v0  ;;  %v217_v2 = vld [vmem:[%s891_s15 + $0x68] sm:$0xff]  ;;  %v216_v3 = vld [vmem:[%s891_s15 + $0x60] sm:$0xff]  ;;  %v215_v4 = vld [vmem:[%s891_s15 + $0x58] sm:$0xff]  ;;  %s197_s19 = scalar_lea.vmem [#allocation7], %s432_s17  ;;  %s920_s23 = scalar_lea.hbm %s969_s2, %s434_s30 }
  0x43   : > { %458 = vmatpush3.msra.mxu0 %v219_v0  ;;  %511 = vmatpush3.msra.mxu1 %v219_v0  ;;  %v214_v5 = vld [vmem:[%s891_s15 + $0x50] sm:$0xff]  ;;  %v213_v6 = vld [vmem:[%s891_s15 + $0x48] sm:$0xff]  ;;  %v212_v7 = vld [vmem:[%s891_s15 + $0x40] sm:$0xff]  ;;  %s325_s22 = sshll.u32 %s197_s19, 4  ;;  %s310_s25 = scalar_lea.sflag [#allocation4], %s887_s29  ;;  %s915_s22 = int_to_ptr.vmem [resolvable:$true] %s325_s22 }
  0x44   : > { %459 = vmatprep.subr.mxu0 %v218_v1  ;;  %496 = vmatprep.subr.mxu1 %v218_v1  ;;  %v211_v8 = vld [vmem:[%s891_s15 + $0x38] sm:$0xff]  ;;  %v210_v9 = vld [vmem:[%s891_s15 + $0x30] sm:$0xff]  ;;  %v209_v10 = vld [vmem:[%s891_s15 + $0x28] sm:$0xff]  ;;  %s660_s12 = scalar_lea.vmem %s915_s22, 512  ;;  %p985_p12 = scmp.ne.s32.totalorder %s977_s20, 0 }
  0x45   : > { %460 = vmatpush3.msra.mxu0 %v218_v1  ;;  %512 = vmatpush3.msra.mxu1 %v218_v1  ;;  %v208_v11 = vld [vmem:[%s891_s15 + $0x20] sm:$0xff]  ;;  %v207_v12 = vld [vmem:[%s891_s15 + $0x18] sm:$0xff]  ;;  %v206_v13 = vld [vmem:[%s891_s15 + $0x10] sm:$0xff]  ;;  %p661_p3 = scmp.ne.s32.totalorder %s915_s22, %s660_s12  ;;  %s751_s28 = smov [#allocation7]  }
  0x46   : > { %461 = vmatprep.subr.mxu0 %v217_v2  ;;  %497 = vmatprep.subr.mxu1 %v217_v2  ;;  %v205_v14 = vld [vmem:[%s891_s15 + $0x8] sm:$0xff]  ;;  %v204_v15 = vld [vmem:[%s891_s15] sm:$0xff]  ;;  %v202_v17 = vld [vmem:[#allocation2 + $0x10] sm:$0xff]  ;;  %s664_s24 = sshll.u32 %s751_s28, 4  ;;  %s665_s24 = int_to_ptr.vmem [resolvable:$false] %s664_s24 }
  0x47   : > { %462 = vmatpush3.msra.mxu0 %v217_v2  ;;  %513 = vmatpush3.msra.mxu1 %v217_v2  ;;  %v200_v16 = vld [vmem:[#allocation2] sm:$0xff]  ;;  %v201_v18 = vld [vmem:[#allocation2 + $0x8] sm:$0xff]  ;;  %v203_v19 = vld [vmem:[#allocation2 + $0x18] sm:$0xff]  ;;  %p662_p13 = pnand %p661_p3, %p985_p12  ;;  %s666_s3 = scalar_lea.vmem %s665_s24, 1024 }
  0x48   : > { %463 = vmatprep.subr.mxu0 %v216_v3  ;;  %498 = vmatprep.subr.mxu1 %v216_v3  ;;  %p667_p6 = scmp.lt.s32.totalorder %s915_s22, %s665_s24  ;;  %p668_p8 = scmp.lt.s32.totalorder %s666_s3, %s660_s12 }
  0x49   : > { %464 = vmatpush3.msra.mxu0 %v216_v3  ;;  %514 = vmatpush3.msra.mxu1 %v216_v3  ;;  %p663_p4 = pneg %p662_p13 }
  0x4a   : > { %465 = vmatprep.subr.mxu0 %v215_v4  ;;  %499 = vmatprep.subr.mxu1 %v215_v4  ;;  %p669_p10 = por %p668_p8, %p667_p6 }
  0x4b   : > { %466 = vmatpush3.msra.mxu0 %v215_v4  ;;  %515 = vmatpush3.msra.mxu1 %v215_v4 }
  0x4c   : > { %467 = vmatprep.subr.mxu0 %v214_v5  ;;  %500 = vmatprep.subr.mxu1 %v214_v5  ;;  %p670_p0 = pnand %p669_p10, %p663_p4 }
  0x4d   : > { %468 = vmatpush3.msra.mxu0 %v214_v5  ;;  %516 = vmatpush3.msra.mxu1 %v214_v5 }
  0x4e   : > { %469 = vmatprep.subr.mxu0 %v213_v6  ;;  %501 = vmatprep.subr.mxu1 %v213_v6 }
  0x4f   : > { %470 = vmatpush3.msra.mxu0 %v213_v6  ;;  %517 = vmatpush3.msra.mxu1 %v213_v6 }
  0x50   : > { %471 = vmatprep.subr.mxu0 %v212_v7  ;;  %502 = vmatprep.subr.mxu1 %v212_v7 }
  0x51   : > { %472 = vmatpush3.msra.mxu0 %v212_v7  ;;  %518 = vmatpush3.msra.mxu1 %v212_v7 }
  0x52   : > { %473 = vmatprep.subr.mxu0 %v211_v8  ;;  %503 = vmatprep.subr.mxu1 %v211_v8 }
  0x53   : > { %474 = vmatpush3.msra.mxu0 %v211_v8  ;;  %519 = vmatpush3.msra.mxu1 %v211_v8 }
  0x54   : > { %475 = vmatprep.subr.mxu0 %v210_v9  ;;  %504 = vmatprep.subr.mxu1 %v210_v9 }
  0x55   : > { %476 = vmatpush3.msra.mxu0 %v210_v9  ;;  %520 = vmatpush3.msra.mxu1 %v210_v9 }
  0x56   : > { %477 = vmatprep.subr.mxu0 %v209_v10  ;;  %505 = vmatprep.subr.mxu1 %v209_v10 }
  0x57   : > { %478 = vmatpush3.msra.mxu0 %v209_v10  ;;  %521 = vmatpush3.msra.mxu1 %v209_v10 }
  0x58   : > { %479 = vmatprep.subr.mxu0 %v208_v11  ;;  %506 = vmatprep.subr.mxu1 %v208_v11 }
  0x59   : > { %480 = vmatpush3.msra.mxu0 %v208_v11  ;;  %522 = vmatpush3.msra.mxu1 %v208_v11 }
  0x5a   : > { %481 = vmatprep.subr.mxu0 %v207_v12  ;;  %507 = vmatprep.subr.mxu1 %v207_v12 }
  0x5b   : > { %482 = vmatpush3.msra.mxu0 %v207_v12  ;;  %523 = vmatpush3.msra.mxu1 %v207_v12 }
  0x5c   : > { %483 = vmatprep.subr.mxu0 %v206_v13  ;;  %508 = vmatprep.subr.mxu1 %v206_v13 }
  0x5d   : > { %484 = vmatpush3.msra.mxu0 %v206_v13  ;;  %524 = vmatpush3.msra.mxu1 %v206_v13 }
  0x5e   : > { %485 = vmatprep.subr.mxu0 %v205_v14  ;;  %509 = vmatprep.subr.mxu1 %v205_v14 }
  0x5f   : > { %486 = vmatpush3.msra.mxu0 %v205_v14  ;;  %525 = vmatpush3.msra.mxu1 %v205_v14 }
  0x60   : > { %487 = vmatprep.subr.mxu0 %v204_v15  ;;  %510 = vmatprep.subr.mxu1 %v204_v15 }
  0x61   : > { %488 = vmatpush3.msra.mxu0 %v204_v15  ;;  %526 = vmatpush3.msra.mxu1 %v204_v15 }
  0x62   : > { %489 = vmatprep.mubr.f32.mxu0 %v200_v16  ;;  %492 = vmatprep.mubr.f32.mxu1 %v202_v17 }
  0x63   : > { %490 = vmatmul.mubr.f32.vlgmr.msra.gmra.mxu0 %v201_v18  ;;  %493 = vmatmul.mubr.f32.vlgmr.msra.gmra.mxu1 %v203_v19 }
 0x123   : > { %v491_v20 = vpop.f32.mrf.mxu0  ;;  %v494_v21 = vpop.f32.mrf.mxu1 }
 0x124   : > { %306 = vst [vmem:[%s197_s19 + $0x8] sm:$0xff] %v491_v20  ;;  %308 = vst [vmem:[%s197_s19 + $0x18] sm:$0xff] %v494_v21 }
 0x125   : > { %v286_v22 = vpop.f32.mrf.mxu0  ;;  %v296_v23 = vpop.f32.mrf.mxu1 }
 0x126   : > { %305 = vst [vmem:[%s197_s19] sm:$0xff] %v286_v22  ;;  %307 = vst [vmem:[%s197_s19 + $0x10] sm:$0xff] %v296_v23 }
 0x127   : > { %673 = shalt.err (!%p670_p0)
}
 0x128   : > { %s674_s4 = scalar_lea.hbm %s920_s23, 512  ;;  %s678_s5 = scalar_lea.hbm %s969_s2, 1536 }
 0x129   : > { %p675_p1 = scmp.ne.s32.totalorder %s920_s23, %s674_s4  ;;  %p679_p9 = scmp.lt.s32.totalorder %s920_s23, %s969_s2 }
 0x12a   : > { %p680_p11 = scmp.lt.s32.totalorder %s678_s5, %s674_s4 }
 0x12b   : > { %p676_p5 = pnand %p675_p1, %p985_p12 }
 0x12c   : > { %p681_p2 = por %p680_p11, %p679_p9 }
 0x12d   : > { %p677_p7 = pneg %p676_p5 }
 0x12f   : > { %p682_p3 = pnand %p681_p2, %p677_p7 }
 0x131   : > { %685 = shalt.err (!%p682_p3)
}
 0x132   : > { %s752_s15 = smov 128   ;;  %s753_s17 = smov 384  }
 0x133   : > { %s754_s19 = smov 8  }
 0x134   : > { %533 = dma.vmem_to_hbm [thread:$0]  (%p985_p12), %s915_s22, 512, %s920_s23, %s310_s25, %s752_s15, %s753_s17, %s754_s19  }
 0x135 PF: > { %s986_s30 = sld [smem:[#allocation11_spill]]  ;;  %p550_p13 = scmp.ge.s32.totalorder %s744_s14, 2 }
 0x136   : > { %s340_s16 = sand.u32 1, %s724_s9  }
 0x137   : > { %s341_s18 = scalar_lea.sflag [#allocation4], %s340_s16 }
 0x13b   : > { %p987_p4 = scmp.ne.s32.totalorder %s986_s30, 0 }
 0x13d   : > { %p544_p6 = pnand %p550_p13, %p987_p4 }
 0x13f   : > { %p545_p8 = pneg %p544_p6 }
 0x141   : > { %719 = dma.done.wait (%p545_p8), %s341_s18, 512  }
 0x142   : > { %721 = vsyncadd (%p545_p8), %s341_s18, 4294966784  ;;  %s19_s14 = sadd.s32 1, %s744_s14   ;;  %s988_s9 = smov %s728_s10 }
 0x143   : > { %p16_p10 = scmp.ge.s32.totalorder %s19_s14, 5   ;;  %s989_s10 = smov %s732_s11 }
 0x144   : > { %s990_s11 = smov %s872_s21  ;;  %s991_s12 = smov %s740_s13 }
 0x145   : > { %s992_s13 = smov %s994_s27  ;;  %18 = sbr.rel (!%p16_p10) target bundleno = 7 (0x7), region = 79 }
 0x14a   :  { %346 = vsyncpa [#allocation3], 1 }
 0x14b   :  { %348 = vsyncpa [#allocation3 + $0x1], 1 }
 0x14c   :  { %349 = vsyncpa [#allocation6], 1 }
 0x14d   :  { %351 = vsyncpa [#allocation6 + $0x1], 1 }
 0x14e   :  { %352 = vsyncpa [#allocation4], 1 }
 0x14f   :  { %354 = vsyncpa [#allocation4 + $0x1], 1 }

</bundles_post_ra>
